<compile_context>
chip_gen: v7x
topology: tpu7x:2x2x1
jax: 0.10.0
libtpu: 0.0.40
codegen_flags: <defaults>
</compile_context>

<pallas_src>
import functools

import jax
import jax.numpy as jnp
from jax.experimental import pallas as pl
from jax.experimental.pallas import tpu as pltpu

REPARAM_NOISE = 1e-6
LANE = 128


def actor_forward_kernel(
    x_ref,    # (D_in, TB)  bf16   state, feature-major (batch on lanes)
    w1_ref,   # (F1, D_in)  bf16
    b1_ref,   # (F1, 1)     f32
    w2_ref,   # (F2, F1)    bf16
    b2_ref,   # (F2, 1)     f32
    wh_ref,   # (2A, F2)    bf16   fused [Wmu ; Wsig]
    bh_ref,   # (2A, 1)     f32    fused [bmu ; bsig]
    out_ref,  # (2A, TB)    f32    [mu ; sigma]
    *,
    n_actions,
):
    x = x_ref[...]

    # fc1 + relu (f32 MXU accumulation; elementwise in f32 -> v5e-safe)
    h1 = jnp.dot(w1_ref[...], x, preferred_element_type=jnp.float32) + b1_ref[...]
    h1 = jnp.maximum(h1, 0.0).astype(jnp.bfloat16)

    # fc2 + relu
    h2 = jnp.dot(w2_ref[...], h1, preferred_element_type=jnp.float32) + b2_ref[...]
    h2 = jnp.maximum(h2, 0.0).astype(jnp.bfloat16)

    # fused mu/sigma heads: one MXU pass producing (2A, TB)
    heads = jnp.dot(wh_ref[...], h2, preferred_element_type=jnp.float32) + bh_ref[...]

    # Clamp only the sigma rows (bottom n_actions sublanes); keep one full-width,
    # lane-dense store of the whole slab.
    row = jax.lax.broadcasted_iota(jnp.int32, heads.shape, 0)
    heads = jnp.where(row >= n_actions,
                      jnp.clip(heads, REPARAM_NOISE, 1.0),
                      heads)

    out_ref[...] = heads.astype(out_ref.dtype)


def _batch_layout(B):
    """Return (padded_B, TB, grid_steps): batch on the 128-wide lane axis."""
    if B <= LANE:
        return B, B, 1                       # one full-extent block
    padded = -(-B // LANE) * LANE            # round up to a lane multiple
    # Prefer >= 2 grid steps (so v7x can shard the parallel axis across its two
    # TensorCores) with tiles of at most 512 lanes; TB is always a 128-multiple,
    # so VMEM stays bounded and pipelining is preserved for any batch size.
    for tb in (512, 384, 256, 128):
        if padded % tb == 0 and padded // tb >= 2:
            return padded, tb, padded // tb
    return padded, LANE, padded // LANE


@jax.jit
def actor_forward(state, params):
    """state: (B, D_in) f32. Returns (mu, sigma), each (B, n_actions) f32."""
    B, D_in = state.shape
    F1 = params["w1"].shape[0]
    F2 = params["w2"].shape[0]
    twoA = params["wheads"].shape[0]
    A = twoA // 2

    padded_B, TB, steps = _batch_layout(B)

    # Feature-major bf16 state slab (D_in, padded_B); zero-pad the batch tail.
    x_t = state.T.astype(jnp.bfloat16)
    if padded_B != B:
        x_t = jnp.pad(x_t, ((0, 0), (0, padded_B - B)))

    weight_args = (
        params["w1"], params["b1"],
        params["w2"], params["b2"],
        params["wheads"], params["bheads"],
    )

    x_spec = pl.BlockSpec((D_in, TB), lambda i: (0, i))
    out_spec = pl.BlockSpec((twoA, TB), lambda i: (0, i))
    # Weights/biases: VMEM-resident across the whole grid, single-buffered.
    resident = lambda a: pl.BlockSpec(a.shape, lambda i: (0, 0),
                                      pipeline_mode=pl.Buffered(1))

    flops = 2 * padded_B * (D_in * F1 + F1 * F2 + F2 * twoA)
    bytes_accessed = (
        2 * D_in * padded_B                        # bf16 state
        + 2 * (F1 * D_in + F2 * F1 + twoA * F2)    # bf16 weights
        + 4 * (F1 + F2 + twoA)                     # f32 biases
        + 4 * twoA * padded_B                      # f32 output
    )

    heads_t = pl.pallas_call(
        functools.partial(actor_forward_kernel, n_actions=A),
        out_shape=jax.ShapeDtypeStruct((twoA, padded_B), jnp.float32),
        grid=(steps,),
        in_specs=[x_spec] + [resident(a) for a in weight_args],
        out_specs=out_spec,
        compiler_params=pltpu.CompilerParams(
            dimension_semantics=("parallel",),
        ),
        cost_estimate=pl.CostEstimate(
            flops=flops, transcendentals=0, bytes_accessed=bytes_accessed),
    )(x_t, *weight_args)

    mu = heads_t[:A, :B].T
    sigma = heads_t[A:, :B].T
    return mu, sigma


def init_params(key, input_dims, fc1_dims, fc2_dims, n_actions):
    """torch.nn.Linear-style init (uniform +-1/sqrt(fan_in)). Weights are stored
    feature-major (out, in) in bf16 for the MXU, biases as (out, 1) f32 columns.
    The mu/sigma heads are fused into one (2A, F2) weight / (2A, 1) bias."""
    def linear(k, fan_in, fan_out):
        kw, kb = jax.random.split(k)
        bound = 1.0 / jnp.sqrt(jnp.float32(fan_in))
        w = jax.random.uniform(kw, (fan_out, fan_in), jnp.float32, -bound, bound)
        b = jax.random.uniform(kb, (fan_out, 1), jnp.float32, -bound, bound)
        return w, b

    k1, k2, k3, k4 = jax.random.split(key, 4)
    w1, b1 = linear(k1, input_dims, fc1_dims)
    w2, b2 = linear(k2, fc1_dims, fc2_dims)
    wmu, bmu = linear(k3, fc2_dims, n_actions)
    wsig, bsig = linear(k4, fc2_dims, n_actions)

    wheads = jnp.concatenate([wmu, wsig], axis=0)   # (2A, F2)
    bheads = jnp.concatenate([bmu, bsig], axis=0)   # (2A, 1)
    bf16 = lambda a: a.astype(jnp.bfloat16)
    return dict(w1=bf16(w1), b1=b1, w2=bf16(w2), b2=b2,
                wheads=bf16(wheads), bheads=bheads)


def reference_forward(state, p):
    """Pure-JAX reference mimicking the kernel math (bf16 inputs, f32 accumulate)."""
    f32 = lambda a: a.astype(jnp.float32)
    x = f32(state.astype(jnp.bfloat16))
    h1 = jnp.maximum(x @ f32(p["w1"]).T + p["b1"].T, 0.0)
    h1 = f32(h1.astype(jnp.bfloat16))
    h2 = jnp.maximum(h1 @ f32(p["w2"]).T + p["b2"].T, 0.0)
    h2 = f32(h2.astype(jnp.bfloat16))
    heads = h2 @ f32(p["wheads"]).T + p["bheads"].T
    A = p["bheads"].shape[0] // 2
    mu = heads[:, :A]
    sigma = jnp.clip(heads[:, A:], REPARAM_NOISE, 1.0)
    return mu, sigma


if __name__ == "__main__":
    key = jax.random.PRNGKey(0)
    k_params, k_state, k_state_big = jax.random.split(key, 3)

    # Small shapes consistent with the module: input_dims=(8,), fc1=32, fc2=32, n_actions=4
    batch, input_dims, fc1_dims, fc2_dims, n_actions = 4, 8, 32, 32, 4

    params = init_params(k_params, input_dims, fc1_dims, fc2_dims, n_actions)
    state = jax.random.normal(k_state, (batch, input_dims), jnp.float32)

    mu, sigma = actor_forward(state, params)
    jax.block_until_ready((mu, sigma))

    mu_ref, sigma_ref = reference_forward(state, params)
    assert mu.shape == (batch, n_actions) and sigma.shape == (batch, n_actions)
    assert jnp.allclose(mu, mu_ref, atol=1e-3, rtol=1e-3)
    assert jnp.allclose(sigma, sigma_ref, atol=1e-3, rtol=1e-3)
    assert bool(jnp.all(sigma >= REPARAM_NOISE)) and bool(jnp.all(sigma <= 1.0))

    # Large, ragged batch: exercises lane padding (1000 -> 1024), TB=512, grid=(2,)
    # so both v7x TensorCores get a step; weights stay VMEM-resident.
    big_batch = 1000
    state_big = jax.random.normal(k_state_big, (big_batch, input_dims), jnp.float32)
    mu_b, sigma_b = actor_forward(state_big, params)
    jax.block_until_ready((mu_b, sigma_b))
    mu_b_ref, sigma_b_ref = reference_forward(state_big, params)
    assert mu_b.shape == (big_batch, n_actions)
    assert jnp.allclose(mu_b, mu_b_ref, atol=1e-3, rtol=1e-3)
    assert jnp.allclose(sigma_b, sigma_b_ref, atol=1e-3, rtol=1e-3)
    assert bool(jnp.all(sigma_b >= REPARAM_NOISE)) and bool(jnp.all(sigma_b <= 1.0))

    print("KERNEL_OK")
</pallas_src>

<mosaic_0001>
module attributes {stable_mosaic.version = 11 : i64} {
  func.func @actor_forward_kernel(%arg0: i32, %arg1: memref<8x4xbf16, #tpu.memory_space<vmem>>, %arg2: memref<32x8xbf16, #tpu.memory_space<vmem>>, %arg3: memref<32x1xf32, #tpu.memory_space<vmem>>, %arg4: memref<32x32xbf16, #tpu.memory_space<vmem>>, %arg5: memref<32x1xf32, #tpu.memory_space<vmem>>, %arg6: memref<8x32xbf16, #tpu.memory_space<vmem>>, %arg7: memref<8x1xf32, #tpu.memory_space<vmem>>, %arg8: memref<8x4xf32, #tpu.memory_space<vmem>>) attributes {dimension_semantics = [#tpu.dimension_semantics<parallel>], iteration_bounds = array<i64: 1>, scalar_prefetch = 0 : i64, scratch_operands = 0 : i64, tpu.core_type = #tpu.core_type<tc>, window_params = [{transform_indices = @transform_0, window_bounds = array<i64: 8, 4>}, {pipeline_mode = #tpu.pipeline_mode<synchronous>, transform_indices = @transform_1, window_bounds = array<i64: 32, 8>}, {pipeline_mode = #tpu.pipeline_mode<synchronous>, transform_indices = @transform_2, window_bounds = array<i64: 32, 1>}, {pipeline_mode = #tpu.pipeline_mode<synchronous>, transform_indices = @transform_3, window_bounds = array<i64: 32, 32>}, {pipeline_mode = #tpu.pipeline_mode<synchronous>, transform_indices = @transform_4, window_bounds = array<i64: 32, 1>}, {pipeline_mode = #tpu.pipeline_mode<synchronous>, transform_indices = @transform_5, window_bounds = array<i64: 8, 32>}, {pipeline_mode = #tpu.pipeline_mode<synchronous>, transform_indices = @transform_6, window_bounds = array<i64: 8, 1>}, {transform_indices = @transform_7, window_bounds = array<i64: 8, 4>}]} {
    %c0 = arith.constant 0 : index
    %c0_0 = arith.constant 0 : index
    %0 = vector.load %arg1[%c0, %c0_0] : memref<8x4xbf16, #tpu.memory_space<vmem>>, vector<8x4xbf16>
    %c0_1 = arith.constant 0 : index
    %c0_2 = arith.constant 0 : index
    %1 = vector.load %arg2[%c0_1, %c0_2] : memref<32x8xbf16, #tpu.memory_space<vmem>>, vector<32x8xbf16>
    %cst = arith.constant dense<0.000000e+00> : vector<32x4xf32>
    %2 = tpu.matmul %1, %0, %cst {dimension_numbers = #tpu.dot_dimension_numbers<[1], [0], [0], [1], [0, 0, 1, 1], [], []>} : vector<32x8xbf16>, vector<8x4xbf16>, vector<32x4xf32> -> vector<32x4xf32>
    %c0_3 = arith.constant 0 : index
    %c0_4 = arith.constant 0 : index
    %3 = vector.load %arg3[%c0_3, %c0_4] : memref<32x1xf32, #tpu.memory_space<vmem>>, vector<32x1xf32>
    %4 = vector.broadcast %3 : vector<32x1xf32> to vector<32x4xf32>
    %5 = arith.addf %2, %4 : vector<32x4xf32>
    %cst_5 = arith.constant 0.000000e+00 : f32
    %6 = vector.broadcast %cst_5 : f32 to vector<32x4xf32>
    %7 = arith.maximumf %5, %6 : vector<32x4xf32>
    %8 = arith.truncf %7 : vector<32x4xf32> to vector<32x4xbf16>
    %c0_6 = arith.constant 0 : index
    %c0_7 = arith.constant 0 : index
    %9 = vector.load %arg4[%c0_6, %c0_7] : memref<32x32xbf16, #tpu.memory_space<vmem>>, vector<32x32xbf16>
    %cst_8 = arith.constant dense<0.000000e+00> : vector<32x4xf32>
    %10 = tpu.matmul %9, %8, %cst_8 {dimension_numbers = #tpu.dot_dimension_numbers<[1], [0], [0], [1], [0, 0, 1, 1], [], []>} : vector<32x32xbf16>, vector<32x4xbf16>, vector<32x4xf32> -> vector<32x4xf32>
    %c0_9 = arith.constant 0 : index
    %c0_10 = arith.constant 0 : index
    %11 = vector.load %arg5[%c0_9, %c0_10] : memref<32x1xf32, #tpu.memory_space<vmem>>, vector<32x1xf32>
    %12 = vector.broadcast %11 : vector<32x1xf32> to vector<32x4xf32>
    %13 = arith.addf %10, %12 : vector<32x4xf32>
    %cst_11 = arith.constant 0.000000e+00 : f32
    %14 = vector.broadcast %cst_11 : f32 to vector<32x4xf32>
    %15 = arith.maximumf %13, %14 : vector<32x4xf32>
    %16 = arith.truncf %15 : vector<32x4xf32> to vector<32x4xbf16>
    %c0_12 = arith.constant 0 : index
    %c0_13 = arith.constant 0 : index
    %17 = vector.load %arg6[%c0_12, %c0_13] : memref<8x32xbf16, #tpu.memory_space<vmem>>, vector<8x32xbf16>
    %cst_14 = arith.constant dense<0.000000e+00> : vector<8x4xf32>
    %18 = tpu.matmul %17, %16, %cst_14 {dimension_numbers = #tpu.dot_dimension_numbers<[1], [0], [0], [1], [0, 0, 1, 1], [], []>} : vector<8x32xbf16>, vector<32x4xbf16>, vector<8x4xf32> -> vector<8x4xf32>
    %c0_15 = arith.constant 0 : index
    %c0_16 = arith.constant 0 : index
    %19 = vector.load %arg7[%c0_15, %c0_16] : memref<8x1xf32, #tpu.memory_space<vmem>>, vector<8x1xf32>
    %20 = vector.broadcast %19 : vector<8x1xf32> to vector<8x4xf32>
    %21 = arith.addf %18, %20 : vector<8x4xf32>
    %22 = tpu.iota {dimensions = array<i32: 0>} : vector<8x4xi32>
    %c4_i32 = arith.constant 4 : i32
    %23 = vector.broadcast %c4_i32 : i32 to vector<8x4xi32>
    %24 = arith.cmpi sge, %22, %23 : vector<8x4xi32>
    %cst_17 = arith.constant 9.99999997E-7 : f32
    %cst_18 = arith.constant 1.000000e+00 : f32
    %25 = vector.broadcast %cst_17 : f32 to vector<8x4xf32>
    %26 = arith.maximumf %25, %21 : vector<8x4xf32>
    %27 = vector.broadcast %cst_18 : f32 to vector<8x4xf32>
    %28 = arith.minimumf %27, %26 : vector<8x4xf32>
    %29 = arith.select %24, %28, %21 : vector<8x4xi1>, vector<8x4xf32>
    %c0_19 = arith.constant 0 : index
    %c0_20 = arith.constant 0 : index
    %30 = vector.load %arg8[%c0_19, %c0_20] : memref<8x4xf32, #tpu.memory_space<vmem>>, vector<8x4xf32>
    tpu.vector_store %arg8[%c0_19, %c0_20], %29 {strides = array<i32>} : memref<8x4xf32, #tpu.memory_space<vmem>>, vector<8x4xf32>,
    return
  }
  func.func @transform_0(%arg0: i32) -> (i32, i32) {
    %c0_i32 = arith.constant 0 : i32
    %c0_i32_0 = arith.constant 0 : i32
    return %c0_i32, %arg0 : i32, i32
  }
  func.func @transform_1(%arg0: i32) -> (i32, i32) {
    %c0_i32 = arith.constant 0 : i32
    %c0_i32_0 = arith.constant 0 : i32
    %c0_i32_1 = arith.constant 0 : i32
    return %c0_i32, %c0_i32_0 : i32, i32
  }
  func.func @transform_2(%arg0: i32) -> (i32, i32) {
    %c0_i32 = arith.constant 0 : i32
    %c0_i32_0 = arith.constant 0 : i32
    %c0_i32_1 = arith.constant 0 : i32
    return %c0_i32, %c0_i32_0 : i32, i32
  }
  func.func @transform_3(%arg0: i32) -> (i32, i32) {
    %c0_i32 = arith.constant 0 : i32
    %c0_i32_0 = arith.constant 0 : i32
    %c0_i32_1 = arith.constant 0 : i32
    return %c0_i32, %c0_i32_0 : i32, i32
  }
  func.func @transform_4(%arg0: i32) -> (i32, i32) {
    %c0_i32 = arith.constant 0 : i32
    %c0_i32_0 = arith.constant 0 : i32
    %c0_i32_1 = arith.constant 0 : i32
    return %c0_i32, %c0_i32_0 : i32, i32
  }
  func.func @transform_5(%arg0: i32) -> (i32, i32) {
    %c0_i32 = arith.constant 0 : i32
    %c0_i32_0 = arith.constant 0 : i32
    %c0_i32_1 = arith.constant 0 : i32
    return %c0_i32, %c0_i32_0 : i32, i32
  }
  func.func @transform_6(%arg0: i32) -> (i32, i32) {
    %c0_i32 = arith.constant 0 : i32
    %c0_i32_0 = arith.constant 0 : i32
    %c0_i32_1 = arith.constant 0 : i32
    return %c0_i32, %c0_i32_0 : i32, i32
  }
  func.func @transform_7(%arg0: i32) -> (i32, i32) {
    %c0_i32 = arith.constant 0 : i32
    %c0_i32_0 = arith.constant 0 : i32
    return %c0_i32, %arg0 : i32, i32
  }
}

</mosaic_0001>

<bundles_post_ra>
// kernel: actor_forward.1
= control target key start
LH: loop header
LB: loop body
LE: loop exit
PB: predicated region body
PF: predicated region fallthrough
CT: control target
= control target key end

     0   :  { %vm73_vm0 = vcmask 1043456   ;;  %vm66_vm1 = vcmask 64512   ;;  %v345_v1 = vmov 0   ;;  %vm170_vm2 = vcmask 261120   ;;  %s441_s0 = inlined_call_operand.vmem [shape: bf16[8,4], index: 0, kind: input, shape index: {}]   ;;  %s442_s1 = inlined_call_operand.vmem [shape: bf16[32,8], index: 1, kind: input, shape index: {}]   ;;  %s443_s2 = inlined_call_operand.vmem [shape: f32[32,1], index: 2, kind: input, shape index: {}]   ;;  %s444_s4 = inlined_call_operand.vmem [shape: f32[32,1], index: 4, kind: input, shape index: {}]   ;;  %s445_s6 = inlined_call_operand.vmem [shape: f32[8,1], index: 6, kind: input, shape index: {}]   ;;  %s446_s3 = inlined_call_operand.vmem [shape: bf16[32,32], index: 3, kind: input, shape index: {}]   ;;  %s447_s5 = inlined_call_operand.vmem [shape: bf16[8,32], index: 5, kind: input, shape index: {}]   ;;  %s448_s7 = inlined_call_operand.vmem [shape: f32[8,4], index: 7, kind: output, shape index: {}]  }
   0x1   :  { %v27_v0 = vld [vmem:[%s441_s0] sm:$0xf]  ;;  %339 = vset.pattern.permute.xlu0 %v345_v1  ;;  %340 = vset.pattern.permute.xlu1 %v345_v1  ;;  %v342_v4 = vld [vmem:[%s442_s1 + $0x8] sm:$0xff]   ;;  %v34_v6 = vld [vmem:[%s443_s2 + $0x10] sm:$0xff]  ;;  %v346_v34 = vmov 0.0   ;;  %vm347_vm3 = vmmov 0   ;;  %v282_v54 = vlaneseq }
   0x2   :  { %335 = vmatprep.subr.msk.bf16.mxu0 %vm73_vm0, %v27_v0  ;;  %v75_v2 = vsel %vm73_vm0, %v27_v0, 0  ;;  %v341_v3 = vld [vmem:[%s442_s1] sm:$0xff]   ;;  %v33_v7 = vld [vmem:[%s443_s2 + $0x8] sm:$0xff]  ;;  %48 = vperm.xlu1 %340, %v34_v6   ;;  %v35_v8 = vld [vmem:[%s443_s2 + $0x18] sm:$0xff]  ;;  %vm288_vm5 = vcmask 31744  }
   0x3   :  { %314 = vmatpush3.bf16.msra.mxu0 %v75_v2  ;;  %v32_v5 = vld [vmem:[%s443_s2] sm:$0xff]  ;;  %315 = vmatprep.mubr.msk.bf16.mxu0 %vm66_vm1, %v341_v3  ;;  %v137_v10 = vld [vmem:[%s444_s4 + $0x8] sm:$0xff]  ;;  %v138_v11 = vld [vmem:[%s444_s4 + $0x10] sm:$0xff]  ;;  %v283_v57 = vshrl.u32 %v282_v54, 7 }
   0x4   :  { %38 = vperm.xlu0 %339, %v32_v5   ;;  %v136_v9 = vld [vmem:[%s444_s4] sm:$0xff]  ;;  %v139_v12 = vld [vmem:[%s444_s4 + $0x18] sm:$0xff]  ;;  %v344_v33 = vld [vmem:[%s446_s3 + $0x8] sm:$0xff]   ;;  %327 = vmatprep.subr.bf16.mxu0 %v346_v34 }
   0x5   :  { %v233_v13 = vld [vmem:[%s445_s6] sm:$0xff]  ;;  %vm284_vm4 = vcmp.ge.s32.totalorder %v283_v57, 4 }
   0x6   :  { %316 = vmatmul.mubr.msk.bf16.vlgmr.msra.gmra.mrb[0].mxu0 %vm66_vm1, %v342_v4  ;;  %53 = vperm.xlu1 %340, %v35_v8   ;;  %v343_v14 = vld [vmem:[%s446_s3] sm:$0xff]  }
   0x7   :  { %323 = vmatprep.mubr.msk.bf16.mxu1 %vm170_vm2, %v343_v14  ;;  %331 = vmatprep.mubr.msk.bf16.mxu0 %vm347_vm3, %v346_v34  ;;  %v232_v53 = vld [vmem:[%s447_s5] sm:$0xf] }
   0x8   :  { %43 = vperm.xlu0 %339, %v33_v7  }
   0xa   :  { %147 = vperm.xlu1 %340, %v137_v10  }
   0xc   :  { %142 = vperm.xlu0 %339, %v136_v9  }
   0xe   :  { %157 = vperm.xlu1 %340, %v139_v12  }
  0x10   :  { %152 = vperm.xlu0 %339, %v138_v11  }
  0x14   :  { %236 = vperm.xlu0 %339, %v233_v13  }
  0x81   :  { %v49_v15 = vpop.permute.xlu1 %48 }
  0x83   :  { %v39_v16 = vpop.permute.xlu0 %38 }
  0x85   :  { %v54_v20 = vpop.permute.xlu1 %53 }
  0x87   :  { %v44_v23 = vpop.permute.xlu0 %43 }
  0x89   :  { %v148_v36 = vpop.permute.xlu1 %147 }
  0x8b   :  { %v143_v35 = vpop.permute.xlu0 %142 }
  0x8d   :  { %v158_v41 = vpop.permute.xlu1 %157 }
  0x8f   :  { %v153_v37 = vpop.permute.xlu0 %152 }
  0x93   :  { %v237_v55 = vpop.permute.xlu0 %236 }
  0xd9   :  { %v317_v17 = vpop.f32.mrb[0].mxu0 }
  0xda   :  { %v120_v18 = vadd.f32 %v317_v17, %v49_v15  ;;  %v111_v19 = vpop.f32.mrb[1].mxu0 }
  0xdb   :  { %v112_v21 = vadd.f32 %v111_v19, %v39_v16  ;;  %v318_v22 = vpop.f32.mrb[2].mxu0 }
  0xdc   :  { %v123_v24 = vadd.f32 %v318_v22, %v54_v20  ;;  %v114_v25 = vpop.f32.mrb[3].mxu0  ;;  %v128_v27 = vmax.f32 %v120_v18, 0.0 }
  0xdd   :  { %v115_v26 = vadd.f32 %v114_v25, %v44_v23  ;;  %v126_v29 = vmax.f32 %v112_v21, 0.0 }
  0xde   :  { %v129_v28 = vmax.f32 %v123_v24, 0.0 }
  0xdf   :  { %v127_v30 = vmax.f32 %v115_v26, 0.0 }
  0xe0   :  { %v131_v31 = vpack.c.bf16 %v129_v28, %v128_v27 }
  0xe1   :  { %v130_v32 = vpack.c.bf16 %v127_v30, %v126_v29 }
  0xe3   :  { %319 = vmatprep.subr.bf16.mxu1 %v130_v32 }
  0xe4   :  { %320 = vmatpush3.bf16.msra.mxu1 %v130_v32 }
  0xe5   :  { %321 = vmatprep.subr.bf16.mxu1 %v131_v31 }
  0xe8   :  { %322 = vmatpush3.bf16.msra.mxu1 %v131_v31 }
  0xeb   :  { %324 = vmatmul.mubr.msk.bf16.vlgmr.msra.gmra.mrb[0].mxu1 %vm170_vm2, %v344_v33 }
 0x1be   :  { %v325_v38 = vpop.f32.mrb[0].mxu1 }
 0x1bf   :  { %v220_v39 = vadd.f32 %v325_v38, %v153_v37  ;;  %v211_v40 = vpop.f32.mrb[1].mxu1 }
 0x1c0   :  { %v212_v42 = vadd.f32 %v211_v40, %v143_v35  ;;  %v326_v43 = vpop.f32.mrb[2].mxu1 }
 0x1c1   :  { %v223_v44 = vadd.f32 %v326_v43, %v158_v41  ;;  %v214_v45 = vpop.f32.mrb[3].mxu1  ;;  %v228_v47 = vmax.f32 %v220_v39, 0.0 }
 0x1c2   :  { %v215_v46 = vadd.f32 %v214_v45, %v148_v36  ;;  %v226_v49 = vmax.f32 %v212_v42, 0.0 }
 0x1c3   :  { %v229_v48 = vmax.f32 %v223_v44, 0.0 }
 0x1c4   :  { %v227_v50 = vmax.f32 %v215_v46, 0.0 }
 0x1c5   :  { %v231_v51 = vpack.c.bf16 %v229_v48, %v228_v47 }
 0x1c6   :  { %v230_v52 = vpack.c.bf16 %v227_v50, %v226_v49 }
 0x1c8   :  { %328 = vmatpush3.bf16.msra.mxu0 %v230_v52 }
 0x1c9   :  { %329 = vmatprep.subr.bf16.mxu0 %v346_v34 }
 0x1cc   :  { %330 = vmatpush3.bf16.msra.mxu0 %v231_v51 }
 0x1cf   :  { %332 = vmatmul.mubr.msk.bf16.vlgmr.msra.gmra.mrb[4].mxu0 %vm170_vm2, %v232_v53 }
 0x2a2   :  { %v276_v56 = vpop.f32.mrb[4].mxu0 }
 0x2a3   :  { %v277_v58 = vadd.f32 %v276_v56, %v237_v55  ;;  %v333_v59 = vpop.f32.mrb[5].mxu0 }
 0x2a4   :  { %v279_v60 = vpop.f32.mrb[6].mxu0 }
 0x2a5   :  { %v285_v61 = vmax.f32 %v277_v58, 1e-06  ;;  %v334_v62 = vpop.f32.mrb[7].mxu0 }
 0x2a7   :  { %v286_v63 = vmin.f32 %v285_v61, 1.0 }
 0x2a9   :  { %v287_v0 = vsel %vm284_vm4, %v286_v63, %v277_v58 }
 0x2aa   :  { %289 = vst.msk [vmem:[%s448_s7] sm:$0xff] %vm288_vm5, %v287_v0 }

</bundles_post_ra>
